<compile_context>
chip_gen: v7x
topology: tpu7x:2x2x1
jax: 0.10.0
libtpu: 0.0.40
codegen_flags: <defaults>
</compile_context>

<pallas_src>
import functools
import math

import jax
import jax.numpy as jnp
import numpy as np
from jax import lax
from jax.experimental import pallas as pl
from jax.experimental.pallas import tpu as pltpu


def _modconv_kernel(x_ref, s_ref, w_ref, mask_ref, o_ref, *,
                    H, W, K, Cin, cout_t, demodulate):
    HW = H * W
    pad = K // 2

    # ---- modulate (+ demodulate) this Cout tile of the pre-scaled weight ----
    # w_ref: (K*K, cout_t, Cin)   s_ref: (1, 1, Cin)   (weight already multiplied by `scale`)
    w = w_ref[...].astype(jnp.float32) * s_ref[...].astype(jnp.float32)
    if demodulate:
        sq = jnp.sum(w * w, axis=0)                          # (cout_t, Cin)
        denom = jnp.sum(sq, axis=1, keepdims=True) + 1e-8    # (cout_t, 1)
        w = w * lax.rsqrt(denom)[None]                       # broadcast (1, cout_t, 1)

    # ---- conv: K*K taps = lane-roll + boundary mask + MXU matmul, accumulated in f32 ----
    x = x_ref[0].astype(jnp.float32)                         # (Cin, H*W)
    acc = jnp.zeros((cout_t, HW), jnp.float32)
    for kh in range(K):
        dy = kh - pad
        for kw in range(K):
            dx = kw - pad
            t = kh * K + kw
            off = dy * W + dx
            if off == 0:
                xs = x
            else:
                # Destination flat index i reads source i + off (with wrap); the mask
                # zeroes every destination whose true 2-D source lies outside the image,
                # which also covers the wrapped elements.
                xs = pltpu.roll(x, shift=(-off) % HW, axis=1)
                xs = xs * mask_ref[t]                        # (1, H*W) broadcast over Cin
            acc = acc + jnp.dot(w[t], xs, preferred_element_type=jnp.float32)

    o_ref[0] = acc.astype(o_ref.dtype)                       # lane-dense (cout_t, H*W) store


def modulated_conv2d(x, style, p, kernel_size=3, demodulate=True, cout_tile=None):
    """ModulatedConv2d.forward (upsample=False, downsample=False).

    x: (B, Cin, H, W) NCHW, style: (B, style_dim).  Returns (B, Cout, H, W).
    """
    B, Cin, H, W = x.shape
    Cout = p["weight"].shape[1]
    K = kernel_size
    pad = K // 2
    HW = H * W

    # TODO(synk): the upsample=True branch (bilinear 2x upsample then conv) and the
    #             downsample path of the original module are not implemented.

    # Style modulation (nn.Linear) once for all batch elements, outside the kernel.
    s = (style @ p["mod_w"].T + p["mod_b"]).reshape(B, 1, Cin).astype(jnp.float32)

    # Pre-scaled weight laid out (K*K, Cout, Cin): tap index on the leading axis so the
    # kernel slices it statically (no sublane-misaligned slicing).
    w = (p["scale"] * p["weight"][0]).transpose(2, 3, 0, 1).reshape(K * K, Cout, Cin)
    w = w.astype(jnp.float32)

    # Per-tap validity masks over the flattened spatial axis (built once on host, tiny).
    rows = np.arange(H).reshape(H, 1)
    cols = np.arange(W).reshape(1, W)
    mask_list = []
    for kh in range(K):
        for kw in range(K):
            dy, dx = kh - pad, kw - pad
            valid = ((rows + dy >= 0) & (rows + dy < H) &
                     (cols + dx >= 0) & (cols + dx < W))
            mask_list.append(valid.reshape(-1))
    masks = jnp.asarray(np.stack(mask_list)[:, None, :].astype(np.float32))  # (K*K, 1, HW)

    # NCHW -> (B, Cin, H*W) is a free reshape (no transpose, no HBM pad round trip).
    x_flat = x.reshape(B, Cin, HW)

    if cout_tile is None:
        cout_tile = Cout if (Cout <= 256 or Cout % 256 != 0) else 256
    n_ct = Cout // cout_tile

    kern = functools.partial(_modconv_kernel, H=H, W=W, K=K, Cin=Cin,
                             cout_t=cout_tile, demodulate=demodulate)

    flops = 2 * B * Cout * HW * Cin * K * K
    bytes_accessed = 4 * (B * Cin * HW * n_ct + B * Cout * HW
                          + B * K * K * Cout * Cin + B * Cin)

    out_flat = pl.pallas_call(
        kern,
        out_shape=jax.ShapeDtypeStruct((B, Cout, HW), x.dtype),
        grid=(B, n_ct),
        in_specs=[
            pl.BlockSpec((1, Cin, HW), lambda b, j: (b, 0, 0)),              # activations
            pl.BlockSpec((1, 1, Cin), lambda b, j: (b, 0, 0)),               # per-batch style
            pl.BlockSpec((K * K, cout_tile, Cin), lambda b, j: (0, j, 0)),   # weight tile
            pl.BlockSpec((K * K, 1, HW), lambda b, j: (0, 0, 0)),            # tap masks
        ],
        out_specs=pl.BlockSpec((1, cout_tile, HW), lambda b, j: (b, j, 0)),
        compiler_params=pltpu.CompilerParams(
            dimension_semantics=("parallel", "parallel"),
            vmem_limit_bytes=32 * 1024 * 1024),
        cost_estimate=pl.CostEstimate(flops=flops, transcendentals=B * Cout,
                                      bytes_accessed=bytes_accessed),
    )(x_flat, s, w, masks)

    return out_flat.reshape(B, Cout, H, W)


def make_params(key, in_channel, out_channel, kernel_size, style_dim):
    k0, k1, k2 = jax.random.split(key, 3)
    weight = jax.random.normal(
        k0, (1, out_channel, in_channel, kernel_size, kernel_size), jnp.float32)
    bound = 1.0 / math.sqrt(style_dim)
    mod_w = jax.random.uniform(k1, (in_channel, style_dim), jnp.float32, -bound, bound)
    mod_b = jax.random.uniform(k2, (in_channel,), jnp.float32, -bound, bound)
    scale = 1.0 / math.sqrt(in_channel * kernel_size ** 2)
    return dict(weight=weight, mod_w=mod_w, mod_b=mod_b, scale=scale)


def reference(x, style, p, K=3, demodulate=True):
    """Pure-JAX reference matching the PyTorch ModulatedConv2d.forward exactly."""
    B, Cin, H, W = x.shape
    Cout = p["weight"].shape[1]
    s = style @ p["mod_w"].T + p["mod_b"]                               # (B, Cin)
    w = p["scale"] * p["weight"] * s.reshape(B, 1, Cin, 1, 1)           # (B, Cout, Cin, K, K)
    if demodulate:
        demod = lax.rsqrt(jnp.sum(w * w, axis=(2, 3, 4)) + 1e-8)        # (B, Cout)
        w = w * demod.reshape(B, Cout, 1, 1, 1)
    outs = []
    for b in range(B):
        outs.append(lax.conv_general_dilated(
            x[b:b + 1], w[b], window_strides=(1, 1),
            padding=((K // 2, K // 2), (K // 2, K // 2)),
            dimension_numbers=("NCHW", "OIHW", "NCHW")))
    return jnp.concatenate(outs, axis=0)


if __name__ == "__main__":
    B, Cin, Cout, K, S, H, W = 2, 4, 8, 3, 8, 16, 16
    key = jax.random.PRNGKey(0)
    kx, ks, kp = jax.random.split(key, 3)
    x = jax.random.normal(kx, (B, Cin, H, W), jnp.float32)
    style = jax.random.normal(ks, (B, S), jnp.float32)
    params = make_params(kp, Cin, Cout, K, S)

    out = modulated_conv2d(x, style, params, K)
    out = jax.block_until_ready(out)

    ref = reference(x, style, params, K)
    assert out.shape == (B, Cout, H, W)
    err = float(jnp.max(jnp.abs(out - ref)))
    assert jnp.allclose(out, ref, atol=1e-4, rtol=1e-4), f"max abs err {err}"
    print("KERNEL_OK")
</pallas_src>

<mosaic_0001>
module attributes {stable_mosaic.version = 11 : i64} {
  func.func @_modconv_kernel(%arg0: i32, %arg1: i32, %arg2: memref<1x4x256xf32, #tpu.memory_space<vmem>>, %arg3: memref<1x1x4xf32, #tpu.memory_space<vmem>>, %arg4: memref<9x8x4xf32, #tpu.memory_space<vmem>>, %arg5: memref<9x1x256xf32, #tpu.memory_space<vmem>>, %arg6: memref<1x8x256xf32, #tpu.memory_space<vmem>>) attributes {dimension_semantics = [#tpu.dimension_semantics<parallel>, #tpu.dimension_semantics<parallel>], iteration_bounds = array<i64: 2, 1>, scalar_prefetch = 0 : i64, scratch_operands = 0 : i64, tpu.core_type = #tpu.core_type<tc>, window_params = [{transform_indices = @transform_0, window_bounds = array<i64: 1, 4, 256>}, {transform_indices = @transform_1, window_bounds = array<i64: 1, 1, 4>}, {transform_indices = @transform_2, window_bounds = array<i64: 9, 8, 4>}, {pipeline_mode = #tpu.pipeline_mode<synchronous>, transform_indices = @transform_3, window_bounds = array<i64: 9, 1, 256>}, {transform_indices = @transform_4, window_bounds = array<i64: 1, 8, 256>}]} {
    %c0 = arith.constant 0 : index
    %c0_0 = arith.constant 0 : index
    %c0_1 = arith.constant 0 : index
    %0 = vector.load %arg4[%c0, %c0_0, %c0_1] : memref<9x8x4xf32, #tpu.memory_space<vmem>>, vector<9x8x4xf32>
    %c0_2 = arith.constant 0 : index
    %c0_3 = arith.constant 0 : index
    %c0_4 = arith.constant 0 : index
    %1 = vector.load %arg3[%c0_2, %c0_3, %c0_4] : memref<1x1x4xf32, #tpu.memory_space<vmem>>, vector<1x1x4xf32>
    %2 = vector.broadcast %1 : vector<1x1x4xf32> to vector<9x8x4xf32>
    %3 = arith.mulf %0, %2 : vector<9x8x4xf32>
    %4 = arith.mulf %3, %3 : vector<9x8x4xf32>
    %cst = arith.constant dense<0.000000e+00> : vector<8x4xf32>
    %5 = vector.multi_reduction <add>, %4, %cst [0] : vector<9x8x4xf32> to vector<8x4xf32>
    %cst_5 = arith.constant dense<0.000000e+00> : vector<8xf32>
    %6 = vector.multi_reduction <add>, %5, %cst_5 [1] : vector<8x4xf32> to vector<8xf32>
    %7 = vector.shape_cast %6 : vector<8xf32> to vector<8x1xf32>
    %cst_6 = arith.constant 9.99999993E-9 : f32
    %8 = vector.broadcast %cst_6 : f32 to vector<8x1xf32>
    %9 = arith.addf %7, %8 : vector<8x1xf32>
    %10 = math.rsqrt %9 : vector<8x1xf32>
    %11 = vector.shape_cast %10 : vector<8x1xf32> to vector<1x8x1xf32>
    %12 = vector.broadcast %11 : vector<1x8x1xf32> to vector<9x8x4xf32>
    %13 = arith.mulf %3, %12 : vector<9x8x4xf32>
    %c0_7 = arith.constant 0 : index
    %c0_8 = arith.constant 0 : index
    %c0_9 = arith.constant 0 : index
    %14 = vector.load %arg2[%c0_7, %c0_8, %c0_9] : memref<1x4x256xf32, #tpu.memory_space<vmem>>, vector<1x4x256xf32>
    %15 = vector.shape_cast %14 : vector<1x4x256xf32> to vector<4x256xf32>
    %cst_10 = arith.constant 0.000000e+00 : f32
    %16 = vector.broadcast %cst_10 : f32 to vector<8x256xf32>
    %c17_i32 = arith.constant 17 : i32
    %17 = tpu.dynamic_rotate %15 by %c17_i32 dim 1 : vector<4x256xf32>, i32 -> vector<4x256xf32>
    %c0_11 = arith.constant 0 : index
    %c0_12 = arith.constant 0 : index
    %c0_13 = arith.constant 0 : index
    %18 = vector.load %arg5[%c0_11, %c0_12, %c0_13] : memref<9x1x256xf32, #tpu.memory_space<vmem>>, vector<1x1x256xf32>
    %19 = vector.shape_cast %18 : vector<1x1x256xf32> to vector<1x256xf32>
    %20 = vector.broadcast %19 : vector<1x256xf32> to vector<4x256xf32>
    %21 = arith.mulf %17, %20 : vector<4x256xf32>
    %22 = vector.extract_strided_slice %13 {offsets = [0, 0, 0], sizes = [1, 8, 4], strides = [1, 1, 1]} : vector<9x8x4xf32> to vector<1x8x4xf32>
    %23 = vector.shape_cast %22 : vector<1x8x4xf32> to vector<8x4xf32>
    %cst_14 = arith.constant dense<0.000000e+00> : vector<8x256xf32>
    %24 = tpu.matmul %23, %21, %cst_14 {dimension_numbers = #tpu.dot_dimension_numbers<[1], [0], [0], [1], [0, 0, 1, 1], [], []>} : vector<8x4xf32>, vector<4x256xf32>, vector<8x256xf32> -> vector<8x256xf32>
    %25 = arith.addf %16, %24 : vector<8x256xf32>
    %c16_i32 = arith.constant 16 : i32
    %26 = tpu.dynamic_rotate %15 by %c16_i32 dim 1 : vector<4x256xf32>, i32 -> vector<4x256xf32>
    %c1 = arith.constant 1 : index
    %c0_15 = arith.constant 0 : index
    %c0_16 = arith.constant 0 : index
    %27 = vector.load %arg5[%c1, %c0_15, %c0_16] : memref<9x1x256xf32, #tpu.memory_space<vmem>>, vector<1x1x256xf32>
    %28 = vector.shape_cast %27 : vector<1x1x256xf32> to vector<1x256xf32>
    %29 = vector.broadcast %28 : vector<1x256xf32> to vector<4x256xf32>
    %30 = arith.mulf %26, %29 : vector<4x256xf32>
    %31 = vector.extract_strided_slice %13 {offsets = [1, 0, 0], sizes = [1, 8, 4], strides = [1, 1, 1]} : vector<9x8x4xf32> to vector<1x8x4xf32>
    %32 = vector.shape_cast %31 : vector<1x8x4xf32> to vector<8x4xf32>
    %cst_17 = arith.constant dense<0.000000e+00> : vector<8x256xf32>
    %33 = tpu.matmul %32, %30, %cst_17 {dimension_numbers = #tpu.dot_dimension_numbers<[1], [0], [0], [1], [0, 0, 1, 1], [], []>} : vector<8x4xf32>, vector<4x256xf32>, vector<8x256xf32> -> vector<8x256xf32>
    %34 = arith.addf %25, %33 : vector<8x256xf32>
    %c15_i32 = arith.constant 15 : i32
    %35 = tpu.dynamic_rotate %15 by %c15_i32 dim 1 : vector<4x256xf32>, i32 -> vector<4x256xf32>
    %c2 = arith.constant 2 : index
    %c0_18 = arith.constant 0 : index
    %c0_19 = arith.constant 0 : index
    %36 = vector.load %arg5[%c2, %c0_18, %c0_19] : memref<9x1x256xf32, #tpu.memory_space<vmem>>, vector<1x1x256xf32>
    %37 = vector.shape_cast %36 : vector<1x1x256xf32> to vector<1x256xf32>
    %38 = vector.broadcast %37 : vector<1x256xf32> to vector<4x256xf32>
    %39 = arith.mulf %35, %38 : vector<4x256xf32>
    %40 = vector.extract_strided_slice %13 {offsets = [2, 0, 0], sizes = [1, 8, 4], strides = [1, 1, 1]} : vector<9x8x4xf32> to vector<1x8x4xf32>
    %41 = vector.shape_cast %40 : vector<1x8x4xf32> to vector<8x4xf32>
    %cst_20 = arith.constant dense<0.000000e+00> : vector<8x256xf32>
    %42 = tpu.matmul %41, %39, %cst_20 {dimension_numbers = #tpu.dot_dimension_numbers<[1], [0], [0], [1], [0, 0, 1, 1], [], []>} : vector<8x4xf32>, vector<4x256xf32>, vector<8x256xf32> -> vector<8x256xf32>
    %43 = arith.addf %34, %42 : vector<8x256xf32>
    %c1_i32 = arith.constant 1 : i32
    %44 = tpu.dynamic_rotate %15 by %c1_i32 dim 1 : vector<4x256xf32>, i32 -> vector<4x256xf32>
    %c3 = arith.constant 3 : index
    %c0_21 = arith.constant 0 : index
    %c0_22 = arith.constant 0 : index
    %45 = vector.load %arg5[%c3, %c0_21, %c0_22] : memref<9x1x256xf32, #tpu.memory_space<vmem>>, vector<1x1x256xf32>
    %46 = vector.shape_cast %45 : vector<1x1x256xf32> to vector<1x256xf32>
    %47 = vector.broadcast %46 : vector<1x256xf32> to vector<4x256xf32>
    %48 = arith.mulf %44, %47 : vector<4x256xf32>
    %49 = vector.extract_strided_slice %13 {offsets = [3, 0, 0], sizes = [1, 8, 4], strides = [1, 1, 1]} : vector<9x8x4xf32> to vector<1x8x4xf32>
    %50 = vector.shape_cast %49 : vector<1x8x4xf32> to vector<8x4xf32>
    %cst_23 = arith.constant dense<0.000000e+00> : vector<8x256xf32>
    %51 = tpu.matmul %50, %48, %cst_23 {dimension_numbers = #tpu.dot_dimension_numbers<[1], [0], [0], [1], [0, 0, 1, 1], [], []>} : vector<8x4xf32>, vector<4x256xf32>, vector<8x256xf32> -> vector<8x256xf32>
    %52 = arith.addf %43, %51 : vector<8x256xf32>
    %53 = vector.extract_strided_slice %13 {offsets = [4, 0, 0], sizes = [1, 8, 4], strides = [1, 1, 1]} : vector<9x8x4xf32> to vector<1x8x4xf32>
    %54 = vector.shape_cast %53 : vector<1x8x4xf32> to vector<8x4xf32>
    %cst_24 = arith.constant dense<0.000000e+00> : vector<8x256xf32>
    %55 = tpu.matmul %54, %15, %cst_24 {dimension_numbers = #tpu.dot_dimension_numbers<[1], [0], [0], [1], [0, 0, 1, 1], [], []>} : vector<8x4xf32>, vector<4x256xf32>, vector<8x256xf32> -> vector<8x256xf32>
    %56 = arith.addf %52, %55 : vector<8x256xf32>
    %c255_i32 = arith.constant 255 : i32
    %57 = tpu.dynamic_rotate %15 by %c255_i32 dim 1 : vector<4x256xf32>, i32 -> vector<4x256xf32>
    %c5 = arith.constant 5 : index
    %c0_25 = arith.constant 0 : index
    %c0_26 = arith.constant 0 : index
    %58 = vector.load %arg5[%c5, %c0_25, %c0_26] : memref<9x1x256xf32, #tpu.memory_space<vmem>>, vector<1x1x256xf32>
    %59 = vector.shape_cast %58 : vector<1x1x256xf32> to vector<1x256xf32>
    %60 = vector.broadcast %59 : vector<1x256xf32> to vector<4x256xf32>
    %61 = arith.mulf %57, %60 : vector<4x256xf32>
    %62 = vector.extract_strided_slice %13 {offsets = [5, 0, 0], sizes = [1, 8, 4], strides = [1, 1, 1]} : vector<9x8x4xf32> to vector<1x8x4xf32>
    %63 = vector.shape_cast %62 : vector<1x8x4xf32> to vector<8x4xf32>
    %cst_27 = arith.constant dense<0.000000e+00> : vector<8x256xf32>
    %64 = tpu.matmul %63, %61, %cst_27 {dimension_numbers = #tpu.dot_dimension_numbers<[1], [0], [0], [1], [0, 0, 1, 1], [], []>} : vector<8x4xf32>, vector<4x256xf32>, vector<8x256xf32> -> vector<8x256xf32>
    %65 = arith.addf %56, %64 : vector<8x256xf32>
    %c241_i32 = arith.constant 241 : i32
    %66 = tpu.dynamic_rotate %15 by %c241_i32 dim 1 : vector<4x256xf32>, i32 -> vector<4x256xf32>
    %c6 = arith.constant 6 : index
    %c0_28 = arith.constant 0 : index
    %c0_29 = arith.constant 0 : index
    %67 = vector.load %arg5[%c6, %c0_28, %c0_29] : memref<9x1x256xf32, #tpu.memory_space<vmem>>, vector<1x1x256xf32>
    %68 = vector.shape_cast %67 : vector<1x1x256xf32> to vector<1x256xf32>
    %69 = vector.broadcast %68 : vector<1x256xf32> to vector<4x256xf32>
    %70 = arith.mulf %66, %69 : vector<4x256xf32>
    %71 = vector.extract_strided_slice %13 {offsets = [6, 0, 0], sizes = [1, 8, 4], strides = [1, 1, 1]} : vector<9x8x4xf32> to vector<1x8x4xf32>
    %72 = vector.shape_cast %71 : vector<1x8x4xf32> to vector<8x4xf32>
    %cst_30 = arith.constant dense<0.000000e+00> : vector<8x256xf32>
    %73 = tpu.matmul %72, %70, %cst_30 {dimension_numbers = #tpu.dot_dimension_numbers<[1], [0], [0], [1], [0, 0, 1, 1], [], []>} : vector<8x4xf32>, vector<4x256xf32>, vector<8x256xf32> -> vector<8x256xf32>
    %74 = arith.addf %65, %73 : vector<8x256xf32>
    %c240_i32 = arith.constant 240 : i32
    %75 = tpu.dynamic_rotate %15 by %c240_i32 dim 1 : vector<4x256xf32>, i32 -> vector<4x256xf32>
    %c7 = arith.constant 7 : index
    %c0_31 = arith.constant 0 : index
    %c0_32 = arith.constant 0 : index
    %76 = vector.load %arg5[%c7, %c0_31, %c0_32] : memref<9x1x256xf32, #tpu.memory_space<vmem>>, vector<1x1x256xf32>
    %77 = vector.shape_cast %76 : vector<1x1x256xf32> to vector<1x256xf32>
    %78 = vector.broadcast %77 : vector<1x256xf32> to vector<4x256xf32>
    %79 = arith.mulf %75, %78 : vector<4x256xf32>
    %80 = vector.extract_strided_slice %13 {offsets = [7, 0, 0], sizes = [1, 8, 4], strides = [1, 1, 1]} : vector<9x8x4xf32> to vector<1x8x4xf32>
    %81 = vector.shape_cast %80 : vector<1x8x4xf32> to vector<8x4xf32>
    %cst_33 = arith.constant dense<0.000000e+00> : vector<8x256xf32>
    %82 = tpu.matmul %81, %79, %cst_33 {dimension_numbers = #tpu.dot_dimension_numbers<[1], [0], [0], [1], [0, 0, 1, 1], [], []>} : vector<8x4xf32>, vector<4x256xf32>, vector<8x256xf32> -> vector<8x256xf32>
    %83 = arith.addf %74, %82 : vector<8x256xf32>
    %c239_i32 = arith.constant 239 : i32
    %84 = tpu.dynamic_rotate %15 by %c239_i32 dim 1 : vector<4x256xf32>, i32 -> vector<4x256xf32>
    %c8 = arith.constant 8 : index
    %c0_34 = arith.constant 0 : index
    %c0_35 = arith.constant 0 : index
    %85 = vector.load %arg5[%c8, %c0_34, %c0_35] : memref<9x1x256xf32, #tpu.memory_space<vmem>>, vector<1x1x256xf32>
    %86 = vector.shape_cast %85 : vector<1x1x256xf32> to vector<1x256xf32>
    %87 = vector.broadcast %86 : vector<1x256xf32> to vector<4x256xf32>
    %88 = arith.mulf %84, %87 : vector<4x256xf32>
    %89 = vector.extract_strided_slice %13 {offsets = [8, 0, 0], sizes = [1, 8, 4], strides = [1, 1, 1]} : vector<9x8x4xf32> to vector<1x8x4xf32>
    %90 = vector.shape_cast %89 : vector<1x8x4xf32> to vector<8x4xf32>
    %cst_36 = arith.constant dense<0.000000e+00> : vector<8x256xf32>
    %91 = tpu.matmul %90, %88, %cst_36 {dimension_numbers = #tpu.dot_dimension_numbers<[1], [0], [0], [1], [0, 0, 1, 1], [], []>} : vector<8x4xf32>, vector<4x256xf32>, vector<8x256xf32> -> vector<8x256xf32>
    %92 = arith.addf %83, %91 : vector<8x256xf32>
    %c0_37 = arith.constant 0 : index
    %c0_38 = arith.constant 0 : index
    %c0_39 = arith.constant 0 : index
    %93 = vector.load %arg6[%c0_37, %c0_38, %c0_39] : memref<1x8x256xf32, #tpu.memory_space<vmem>>, vector<1x8x256xf32>
    %94 = vector.shape_cast %93 : vector<1x8x256xf32> to vector<8x256xf32>
    %95 = vector.shape_cast %92 : vector<8x256xf32> to vector<1x8x256xf32>
    tpu.vector_store %arg6[%c0_37, %c0_38, %c0_39], %95 {strides = array<i32>} : memref<1x8x256xf32, #tpu.memory_space<vmem>>, vector<1x8x256xf32>,
    return
  }
  func.func @transform_0(%arg0: i32, %arg1: i32) -> (i32, i32, i32) {
    %c0_i32 = arith.constant 0 : i32
    %c0_i32_0 = arith.constant 0 : i32
    %c0_i32_1 = arith.constant 0 : i32
    return %arg0, %c0_i32, %c0_i32_0 : i32, i32, i32
  }
  func.func @transform_1(%arg0: i32, %arg1: i32) -> (i32, i32, i32) {
    %c0_i32 = arith.constant 0 : i32
    %c0_i32_0 = arith.constant 0 : i32
    %c0_i32_1 = arith.constant 0 : i32
    return %arg0, %c0_i32, %c0_i32_0 : i32, i32, i32
  }
  func.func @transform_2(%arg0: i32, %arg1: i32) -> (i32, i32, i32) {
    %c0_i32 = arith.constant 0 : i32
    %c0_i32_0 = arith.constant 0 : i32
    %c0_i32_1 = arith.constant 0 : i32
    return %c0_i32, %arg1, %c0_i32_0 : i32, i32, i32
  }
  func.func @transform_3(%arg0: i32, %arg1: i32) -> (i32, i32, i32) {
    %c0_i32 = arith.constant 0 : i32
    %c0_i32_0 = arith.constant 0 : i32
    %c0_i32_1 = arith.constant 0 : i32
    %c0_i32_2 = arith.constant 0 : i32
    return %c0_i32, %c0_i32_0, %c0_i32_1 : i32, i32, i32
  }
  func.func @transform_4(%arg0: i32, %arg1: i32) -> (i32, i32, i32) {
    %c0_i32 = arith.constant 0 : i32
    %c0_i32_0 = arith.constant 0 : i32
    return %arg0, %arg1, %c0_i32 : i32, i32, i32
  }
}

</mosaic_0001>

<bundles_post_ra>
// kernel: tpu_custom_call.1
= control target key start
LH: loop header
LB: loop body
LE: loop exit
PB: predicated region body
PF: predicated region fallthrough
CT: control target
= control target key end

     0   :  { %9 = vsyncpa [#allocation3], 0  ;;  %s1911_s0 = inlined_call_operand.vmem [shape: f32[2,4,256], index: 0, kind: input, shape index: {}]   ;;  %s1912_s1 = inlined_call_operand.vmem [shape: f32[2,1,4], index: 1, kind: input, shape index: {}]   ;;  %s1913_s2 = inlined_call_operand.vmem [shape: f32[9,8,4], index: 2, kind: input, shape index: {}]   ;;  %s1914_s3 = inlined_call_operand.vmem [shape: f32[9,1,256], index: 3, kind: input, shape index: {}]   ;;  %s1915_s4 = inlined_call_operand.hbm [shape: f32[2,8,256], index: 4, kind: output, shape index: {}]  }
   0x1   :  { %11 = vsyncpa [#allocation3 + $0x1], 0  ;;  %s1583_s15 = smov 0   ;;  %s1585_s16 = smov 0  }
   0x2   :  { %s1587_s17 = smov 0   ;;  %s1589_s18 = smov 0  }
   0x3   :  { %s1591_s19 = smov 0   ;;  %s1593_s20 = smov 0  }
   0x4 LB: > { %s1334_s21 = sadd.s32 4294967295, %s1546_s20   ;;  %s1335_s22 = sadd.s32 4294967294, %s1546_s20   ;;  %s1546_s20 = sphi %s1593_s20, %s17_s20   ;;  %s1542_s19 = sphi %s1591_s19, %s1922_s19   ;;  %s1538_s18 = sphi %s1589_s18, %s1921_s18   ;;  %s1534_s17 = sphi %s1587_s17, %s1920_s17   ;;  %s1530_s16 = sphi %s1585_s16, %s1919_s16   ;;  %s1526_s15 = sphi %s1583_s15, %s1918_s15  }
   0x5   : > { %s29_s23 = sadd.s32 1, %s1542_s19  ;;  %s137_s24 = sadd.s32 1, %s1534_s17 }
   0x6   : > { %p31_p0 = scmp.ge.s32.totalorder %s29_s23, 2  ;;  %p147_p1 = scmp.ne.s32.totalorder %s1534_s17, %s1530_s16 }
   0x7   : > { %p148_p2 = scmp.eq.s32.totalorder %s1334_s21, 1  ;;  %p153_p3 = scmp.ne.s32.totalorder %s1530_s16, %s1526_s15 }
   0x8   : > { %s1924_s23 = smov (%p31_p0, %s29_s23), 0  ;;  %p154_p5 = scmp.eq.s32.totalorder %s1335_s22, 1 }
   0x9   : > { %p1623_p4 = por %p148_p2, %p147_p1  ;;  %s132_s26 = ssub.s32 %s1542_s19, %s1924_s23 }
   0xa   : > { %p1339_p6 = scmp.ge.s32.totalorder %s1546_s20, 1  ;;  %p135_p7 = scmp.eq.s32.totalorder %s132_s26, 0 }
   0xb   : > { %p1630_p8 = por %p154_p5, %p153_p3  ;;  %p196_p9 = scmp.lt.s32.totalorder %s1546_s20, 3 }
   0xc   : > { %s1636_s28 = scalar_select %p135_p7, %s1534_s17, %s137_s24  }
   0xd   : > { %p197_p10 = pnand %p1339_p6, %p196_p9 }
   0xe   : > { %p229_p11 = scmp.lt.s32.totalorder (!%p197_p10), %s1538_s18, 1  ;;  %v241_v0 = vld [vmem:[%s1913_s2] sm:$0xff] (!%p197_p10)  ;;  %v242_v1 = vld [vmem:[%s1913_s2 + $0x8] sm:$0xff] (!%p197_p10)  ;;  %v243_v2 = vld [vmem:[%s1913_s2 + $0x10] sm:$0xff] (!%p197_p10)  ;;  %vm275_vm0 = vcmask (!%p197_p10), 31744   ;;  %s1548_s13 = smov (!%p197_p10), 16   ;;  %v315_v49 = vlaneseq (!%p197_p10) }
   0xf   : > { %200 = sbr.rel (%p197_p10) target bundleno = 466 (0x1d2), region = 36  ;;  %v244_v3 = vld [vmem:[%s1913_s2 + $0x18] sm:$0xff] (!%p197_p10)  ;;  %v245_v4 = vld [vmem:[%s1913_s2 + $0x20] sm:$0xff] (!%p197_p10)  ;;  %v246_v5 = vld [vmem:[%s1913_s2 + $0x28] sm:$0xff] (!%p197_p10)  ;;  %s1550_s21 = smov (!%p197_p10), 17   ;;  %vm359_vm1 = vcmask (!%p197_p10), 1043456  }
  0x10   : > { %v247_v11 = vld [vmem:[%s1913_s2 + $0x30] sm:$0xff] (!%p197_p10)  ;;  %v248_v17 = vld [vmem:[%s1913_s2 + $0x38] sm:$0xff] (!%p197_p10)  ;;  %v249_v24 = vld [vmem:[%s1913_s2 + $0x40] sm:$0xff] (!%p197_p10)  ;;  %s1551_s22 = smov (!%p197_p10), 113   ;;  %s1553_s26 = smov (!%p197_p10), 112   ;;  %v1555_v48 = vmov (!%p197_p10), 0.0  }
  0x11   : > { %s1554_s30 = smov (!%p197_p10), 1   ;;  %430 = vmatprep.mubr.f32.mxu1 (!%p197_p10), %v1555_v48  ;;  %796 = vmatprep.mubr.f32.mxu0 (!%p197_p10), %v1555_v48  ;;  %s1556_s5 = smov (!%p197_p10), 111   ;;  %v323_v51 = vshrl.u32 (!%p197_p10), %v315_v49, 7  ;;  %v1362_v52 = vld [vmem:[%s1914_s3 + $0xa] sm:$0x3] (!%p197_p10)  ;;  %v1728_v54 = vand.u32 (!%p197_p10), 127, %v315_v49 }
  0x12   : > { %s226_s6 = sand.u32 (!%p197_p10), 1, %s1530_s16   ;;  %s1384_s7 = sshll.u32 (!%p197_p10), %s1538_s18, 8 }
  0x13   : > { %v1730_v55 = vsub.s32 (!%p197_p10), 1, %v323_v51  ;;  %vm809_vm2 = vcmp.lt.s32.totalorder (!%p197_p10), %v1728_v54, 127  ;;  %vm317_vm3 = vcmp.lt.s32.totalorder (!%p197_p10), %v1728_v54, 17  ;;  %vm338_vm4 = vcmp.lt.s32.totalorder (!%p197_p10), %v1728_v54, 16  ;;  %s1864_s12 = scalar_lea.hbm (!%p197_p10), %s1915_s4, %s1384_s7 }
  0x14   : > { %vm913_vm5 = vcmp.lt.s32.totalorder (!%p197_p10), %v1728_v54, 113  ;;  %vm521_vm6 = vcmp.lt.s32.totalorder (!%p197_p10), %v1728_v54, 15  ;;  %vm1017_vm7 = vcmp.lt.s32.totalorder (!%p197_p10), %v1728_v54, 112  ;;  %vm625_vm8 = vcmp.lt.s32.totalorder (!%p197_p10), %v1728_v54, 1 }
  0x15   : > { %v822_v56 = vrot.slane (!%p197_p10), %v1362_v52, %v1730_v55  ;;  %vm1121_vm9 = vcmp.lt.s32.totalorder (!%p197_p10), %v1728_v54, 111 }
  0x16   : > { %s230_s29 = scalar_select %p229_p11, %s1538_s18, 1 }
  0x18   : > { %s236_s14 = scalar_lea.vmem %s1912_s1, %s230_s29  ;;  %s1383_s24 = sshll.u32 %s230_s29, 3 }
  0x19   : > { %v1343_v6 = vld [vmem:[%s236_s14] ss:$0 sm:$0xff]  ;;  %s233_s8 = scalar_lea.vmem %s1911_s0, %s1383_s24  ;;  %s1549_s14 = smov 127  }
  0x1a   : > { %v1661_v7 = vmul.f32 %v1343_v6, %v241_v0  ;;  %v1663_v8 = vmul.f32 %v1343_v6, %v242_v1  ;;  %v1665_v9 = vmul.f32 %v1343_v6, %v243_v2  ;;  %v1667_v10 = vmul.f32 %v1343_v6, %v244_v3  ;;  %v307_v23 = vld [vmem:[%s233_s8] sm:$0xff]  ;;  %s1552_s24 = smov 15   ;;  %s1340_s29 = sshll.u32 %s226_s6, 4 }
  0x1b   : > { %v1672_v12 = vmul.f32 %v1343_v6, %v245_v4  ;;  %v1677_v13 = vmul.f32 %v1343_v6, %v246_v5  ;;  %v1690_v19 = vmul.f32 %v1343_v6, %v247_v11  ;;  %v1700_v27 = vmul.f32 %v1343_v6, %v248_v17  ;;  %v1344_v1 = vld [vmem:[%s1914_s3 + $0x2] sm:$0x3]  ;;  %v320_v2 = vld [vmem:[%s1914_s3] sm:$0x3]  ;;  %s228_s8 = scalar_lea.vmem [#allocation2], %s1340_s29 }
  0x1c   : > { %v266_v14 = vmul.f32 %v1661_v7, %v1661_v7  ;;  %v267_v15 = vmul.f32 %v1663_v8, %v1663_v8  ;;  %v268_v16 = vmul.f32 %v1665_v9, %v1665_v9  ;;  %v269_v18 = vmul.f32 %v1667_v10, %v1667_v10  ;;  %s1240_s9 = sshll.u32 %s228_s8, 4  ;;  %s1866_s9 = int_to_ptr.vmem [resolvable:$true] %s1240_s9 }
  0x1d   : > { %v270_v20 = vmul.f32 %v1672_v12, %v1672_v12  ;;  %v271_v28 = vmul.f32 %v1677_v13, %v1677_v13  ;;  %v309_v31 = vcombine.high %v307_v23, %v307_v23  ;;  %v1705_v32 = vmul.f32 %v1343_v6, %v249_v24  ;;  %s1468_s18 = scalar_lea.vmem %s1866_s9, 256 }
  0x1e   : > { %v276_v21 = vsel %vm275_vm0, %v266_v14, 0.0  ;;  %v277_v22 = vsel %vm275_vm0, %v267_v15, 0.0  ;;  %v279_v26 = vsel %vm275_vm0, %v268_v16, 0.0  ;;  %v281_v29 = vsel %vm275_vm0, %v269_v18, 0.0  ;;  %p1469_p12 = scmp.ne.s32.totalorder %s1866_s9, %s1468_s18 }
  0x1f   : > { %v278_v25 = vadd.f32 %v277_v22, %v276_v21  ;;  %v272_v33 = vmul.f32 %v1690_v19, %v1690_v19  ;;  %v283_v34 = vsel %vm275_vm0, %v270_v20, 0.0  ;;  %336 = vrot.lane.b32.xlu1 %v309_v31, %s1548_s13  ;;  %v273_v36 = vmul.f32 %v1700_v27, %v1700_v27  ;;  %1359 = vmatprep.subr.msk.mxu0 %vm359_vm1, %v309_v31 }
  0x20   : > { %v285_v37 = vsel %vm275_vm0, %v271_v28, 0.0  ;;  %v274_v39 = vmul.f32 %v1705_v32, %v1705_v32  ;;  %1360 = vmatpush1.msk.msra.mxu0 %vm359_vm1, %v307_v23  ;;  %v1737_v0 = vsub.s32 0, %v323_v51  ;;  %v329_v6 = vrot.slane %v320_v2, %v1730_v55  ;;  %p1470_p13 = pnand %p1469_p12, %p1623_p4 }
  0x21   : > { %v280_v30 = vadd.f32 %v279_v26, %v278_v25  ;;  %v287_v40 = vsel %vm275_vm0, %v272_v33, 0.0  ;;  %v289_v42 = vsel %vm275_vm0, %v273_v36, 0.0  ;;  %v351_v11 = vrot.slane %v1344_v1, %v1730_v55  ;;  %v1351_v25 = vld [vmem:[%s1914_s3 + $0x4] sm:$0x3] }
  0x22   : > { %v291_v44 = vsel %vm275_vm0, %v274_v39, 0.0  ;;  %v347_v5 = vrot.slane %v1344_v1, %v1737_v0  ;;  %v325_v28 = vrot.slane %v320_v2, %v1737_v0  ;;  %p1471_p0 = pneg %p1470_p13 }
  0x23   : > { %v282_v35 = vadd.f32 %v281_v29, %v280_v30  ;;  %805 = vrot.lane.b32.xlu1 %v307_v23, %s1549_s14 }
  0x25   : > { %v284_v38 = vadd.f32 %v283_v34, %v282_v35  ;;  %v534_v34 = vrot.slane %v1351_v25, %v1730_v55 }
  0x27   : > { %v286_v41 = vadd.f32 %v285_v37, %v284_v38  ;;  %807 = vrot.lane.b32.xlu1 %v309_v31, %s1549_s14  ;;  %s1557_s14 = smov [#allocation2]  }
  0x29   : > { %v288_v43 = vadd.f32 %v287_v40, %v286_v41 }
  0x2b   : > { %v290_v45 = vadd.f32 %v289_v42, %v288_v43  ;;  %311 = vrot.lane.b32.xlu1 %v307_v23, %s1550_s21 }
  0x2d   : > { %v292_v46 = vadd.f32 %v291_v44, %v290_v45 }
  0x2f   : > { %v293_v47 = vsel %vm275_vm0, %v292_v46, 0.0  ;;  %313 = vrot.lane.b32.xlu1 %v309_v31, %s1550_s21  ;;  %v1374_v46 = vld [vmem:[%s1914_s3 + $0x10] sm:$0x3]  ;;  %s1472_s21 = sshll.u32 %s1557_s14, 4  ;;  %s1473_s21 = int_to_ptr.vmem [resolvable:$false] %s1472_s21 }
  0x30   : > { %294 = vadd.xlane.f32.xlu0 %v293_v47  ;;  %v1370_v47 = vld [vmem:[%s1914_s3 + $0xe] sm:$0x3]  ;;  %p1475_p1 = scmp.lt.s32.totalorder %s1866_s9, %s1473_s21 }
  0x33   : > { %909 = vrot.lane.b32.xlu1 %v307_v23, %s1551_s22 }
  0x37   : > { %911 = vrot.lane.b32.xlu1 %v309_v31, %s1551_s22  ;;  %s1474_s22 = scalar_lea.vmem %s1473_s21, 512 }
  0x38   : > { %p1476_p2 = scmp.lt.s32.totalorder %s1474_s22, %s1468_s18 }
  0x3a   : > { %p1477_p3 = por %p1476_p2, %p1475_p1 }
  0x3b   : > { %519 = vrot.lane.b32.xlu1 %v309_v31, %s1552_s24 }
  0x3c   : > { %p1478_p5 = pnand %p1477_p3, %p1471_p0 }
  0x3f   : > { %1015 = vrot.lane.b32.xlu1 %v309_v31, %s1553_s26 }
  0x43   : > { %623 = vrot.lane.b32.xlu1 %v309_v31, %s1554_s30 }
  0x46   : > { %334 = vrot.lane.b32.xlu0 %v307_v23, %s1548_s13  ;;  %s1224_s13 = scalar_lea.sflag [#allocation3], %s226_s6 }
  0x47   : > { %1119 = vrot.lane.b32.xlu1 %v309_v31, %s1556_s5  ;;  %v818_v31 = vrot.slane %v1362_v52, %v1737_v0 }
  0x4a   : > { %517 = vrot.lane.b32.xlu0 %v307_v23, %s1552_s24 }
  0x4e   : > { %1013 = vrot.lane.b32.xlu0 %v307_v23, %s1553_s26 }
  0x52   : > { %621 = vrot.lane.b32.xlu0 %v307_v23, %s1554_s30 }
  0x56   : > { %1117 = vrot.lane.b32.xlu0 %v307_v23, %s1556_s5  ;;  %v1366_v23 = vld [vmem:[%s1914_s3 + $0xc] sm:$0x3] }
  0x57   : > { %v926_v30 = vrot.slane %v1366_v23, %v1730_v55 }
  0x91   : > { %v337_v50 = vpop.permute.xlu1 %336 }
  0x95   : > { %v806_v53 = vpop.permute.xlu1 %805 }
  0x99   : > { %v808_v57 = vpop.permute.xlu1 %807 }
  0x9a   : > { %v811_v58 = vsel %vm809_vm2, %v808_v57, %v806_v53  ;;  %v810_v35 = vsel %vm809_vm2, %v806_v53, %v808_v57  ;;  %v1134_v53 = vrot.slane %v1374_v46, %v1730_v55  ;;  %v1030_v57 = vrot.slane %v1370_v47, %v1730_v55 }
  0x9b   : > { %v826_v59 = vmul.f32 %v822_v56, %v811_v58  ;;  %v825_v44 = vmul.f32 %v818_v31, %v810_v35 }
  0x9d   : > { %1363 = vmatprep.subr.msk.mxu0 %vm359_vm1, %v826_v59  ;;  %v312_v60 = vpop.permute.xlu1 %311 }
  0xa1   : > { %v314_v61 = vpop.permute.xlu1 %313 }
  0xa2   : > { %v318_v15 = vsel %vm317_vm3, %v312_v60, %v314_v61  ;;  %v319_v29 = vsel %vm317_vm3, %v314_v61, %v312_v60 }
  0xa3   : > { %v333_v21 = vmul.f32 %v329_v6, %v318_v15  ;;  %v332_v39 = vmul.f32 %v325_v28, %v319_v29  ;;  %v1026_v6 = vrot.slane %v1370_v47, %v1737_v0 }
  0xa5   : > { %v910_v62 = vpop.permute.xlu1 %909 }
  0xa9   : > { %v912_v63 = vpop.permute.xlu1 %911 }
  0xaa   : > { %v915_v33 = vsel %vm913_vm5, %v912_v63, %v910_v62  ;;  %v914_v51 = vsel %vm913_vm5, %v910_v62, %v912_v63 }
  0xab   : > { %v930_v40 = vmul.f32 %v926_v30, %v915_v33 }
  0xad   : > { %v520_v14 = vpop.permute.xlu1 %519 }
  0xb1   : > { %v1016_v26 = vpop.permute.xlu1 %1015 }
  0xb5   : > { %v624_v43 = vpop.permute.xlu1 %623 }
  0xb9   : > { %v1120_v56 = vpop.permute.xlu1 %1119 }
  0xbd   : > { %v295_v3 = vpop.xlane.xlu0 %294 }
  0xbe   : > { %v296_v4 = vadd.f32 1e-08, %v295_v3 }
  0xc0   : > { %1466 = vrsqrt.f32 %v296_v4 }
  0xc1   : > { %v335_v16 = vpop.permute.xlu0 %334 }
  0xc2   : > { %v339_v17 = vsel %vm338_vm4, %v335_v16, %v337_v50  ;;  %v340_v18 = vsel %vm338_vm4, %v337_v50, %v335_v16  ;;  %v530_v50 = vrot.slane %v1351_v25, %v1737_v0 }
  0xc3   : > { %v354_v20 = vmul.f32 %v347_v5, %v340_v18  ;;  %v355_v22 = vmul.f32 %v351_v11, %v339_v17  ;;  %v1130_v18 = vrot.slane %v1374_v46, %v1737_v0 }
  0xc5   : > { %1345 = vmatprep.subr.msk.mxu1 %vm359_vm1, %v355_v22  ;;  %v518_v24 = vpop.permute.xlu0 %517 }
  0xc6   : > { %1346 = vmatpush1.msk.msra.mxu1 %vm359_vm1, %v354_v20  ;;  %v522_v36 = vsel %vm521_vm6, %v518_v24, %v520_v14  ;;  %v523_v52 = vsel %vm521_vm6, %v520_v14, %v518_v24 }
  0xc7   : > { %1348 = vmatprep.subr.msk.mxu1 %vm359_vm1, %v333_v21  ;;  %v538_v45 = vmul.f32 %v534_v34, %v522_v36  ;;  %v537_v63 = vmul.f32 %v530_v50, %v523_v52 }
  0xc9   : > { %v1014_v37 = vpop.permute.xlu0 %1013 }
  0xca   : > { %v1775_v38 = vpop.eup %1466  ;;  %v1019_v59 = vsel %vm1017_vm7, %v1016_v26, %v1014_v37 }
  0xcb   : > { %v299_v41 = vmul.f32 %v1775_v38, %v1663_v8  ;;  %v302_v42 = vmul.f32 %v1775_v38, %v1672_v12  ;;  %v1355_v8 = vld [vmem:[%s1914_s3 + $0x6] sm:$0x3]  ;;  %v922_v12 = vrot.slane %v1366_v23, %v1737_v0  ;;  %v298_v2 = vmul.f32 %v1775_v38, %v1661_v7 }
  0xcc   : > { %v638_v58 = vrot.slane %v1355_v8, %v1730_v55  ;;  %v303_v3 = vmul.f32 %v1775_v38, %v1677_v13  ;;  %v1034_v55 = vmul.f32 %v1030_v57, %v1019_v59  ;;  %v634_v11 = vrot.slane %v1355_v8, %v1737_v0 }
  0xcd   : > { %1347 = vmatmul.mubr.msk.f32.vlgmr.msra.gmra.mrb[0].mxu1 %vm275_vm0, %v299_v41  ;;  %1361 = vmatmul.mubr.msk.f32.vlgmr.msra.gmra.mrb[0].mxu0 %vm275_vm0, %v302_v42  ;;  %v622_v49 = vpop.permute.xlu0 %621  ;;  %v929_v62 = vmul.f32 %v922_v12, %v914_v51  ;;  %v1018_v7 = vsel %vm1017_vm7, %v1014_v37, %v1016_v26  ;;  %v300_v16 = vmul.f32 %v1775_v38, %v1665_v9 }
  0xce   : > { %1349 = vmatpush1.msk.msra.mxu1 %vm359_vm1, %v332_v39  ;;  %1364 = vmatpush1.msk.msra.mxu0 %vm359_vm1, %v825_v44  ;;  %v626_v60 = vsel %vm625_vm8, %v622_v49, %v624_v43  ;;  %v627_v13 = vsel %vm625_vm8, %v624_v43, %v622_v49  ;;  %v1033_v14 = vmul.f32 %v1026_v6, %v1018_v7 }
  0xcf   : > { %1367 = vmatprep.subr.msk.mxu0 %vm359_vm1, %v930_v40  ;;  %510 = vmatprep.mubr.f32.mxu1 %v1555_v48  ;;  %v642_v5 = vmul.f32 %v638_v58, %v626_v60  ;;  %v641_v15 = vmul.f32 %v634_v11, %v627_v13  ;;  %v304_v17 = vmul.f32 %v1775_v38, %v1690_v19 }
  0xd0   : > { %900 = vmatprep.mubr.f32.mxu0 %v1555_v48  ;;  %1352 = vmatprep.subr.msk.mxu1 %vm359_vm1, %v538_v45  ;;  %v301_v19 = vmul.f32 %v1775_v38, %v1667_v10  ;;  %v305_v21 = vmul.f32 %v1775_v38, %v1700_v27  ;;  %v306_v54 = vmul.f32 %v1775_v38, %v1705_v32 }
  0xd1   : > { %v1118_v61 = vpop.permute.xlu0 %1117 }
  0xd2   : > { %v1123_v1 = vsel %vm1121_vm9, %v1120_v56, %v1118_v61  ;;  %v1122_v20 = vsel %vm1121_vm9, %v1118_v61, %v1120_v56 }
  0xd3   : > { %v1138_v4 = vmul.f32 %v1134_v53, %v1123_v1  ;;  %v1137_v9 = vmul.f32 %v1130_v18, %v1122_v20 }
  0xd5   : > { %1350 = vmatmul.mubr.msk.f32.vlgmr.msra.gmra.mrb[0].mxu1 %vm275_vm0, %v298_v2  ;;  %1365 = vmatmul.mubr.msk.f32.vlgmr.msra.gmra.mrb[0].mxu0 %vm275_vm0, %v303_v3 }
  0xd6   : > { %1368 = vmatpush1.msk.msra.mxu0 %vm359_vm1, %v929_v62  ;;  %1353 = vmatpush1.msk.msra.mxu1 %vm359_vm1, %v537_v63 }
  0xd7   : > { %612 = vmatprep.mubr.f32.mxu1 %v1555_v48  ;;  %1004 = vmatprep.mubr.f32.mxu0 %v1555_v48 }
  0xd8   : > { %1371 = vmatprep.subr.msk.mxu0 %vm359_vm1, %v1034_v55  ;;  %1356 = vmatprep.subr.msk.mxu1 %vm359_vm1, %v642_v5 }
  0xdd   : > { %1354 = vmatmul.mubr.msk.f32.vlgmr.msra.gmra.mrb[0].mxu1 %vm275_vm0, %v300_v16  ;;  %1369 = vmatmul.mubr.msk.f32.vlgmr.msra.gmra.mrb[0].mxu0 %vm275_vm0, %v304_v17 }
  0xde   : > { %1372 = vmatpush1.msk.msra.mxu0 %vm359_vm1, %v1033_v14  ;;  %1357 = vmatpush1.msk.msra.mxu1 %vm359_vm1, %v641_v15 }
  0xdf   : > { %716 = vmatprep.mubr.f32.mxu1 %v1555_v48  ;;  %1108 = vmatprep.mubr.f32.mxu0 %v1555_v48 }
  0xe0   : > { %1375 = vmatprep.subr.msk.mxu0 %vm359_vm1, %v1138_v4 }
  0xe5   : > { %1358 = vmatmul.mubr.msk.f32.vlgmr.msra.gmra.mrb[0].mxu1 %vm275_vm0, %v301_v19  ;;  %1373 = vmatmul.mubr.msk.f32.vlgmr.msra.gmra.mrb[0].mxu0 %vm275_vm0, %v305_v21 }
  0xe6   : > { %1376 = vmatpush1.msk.msra.mxu0 %vm359_vm1, %v1137_v9  ;;  %1212 = vmatprep.mubr.f32.mxu0 %v1555_v48 }
  0xed   : > { %1377 = vmatmul.mubr.msk.f32.vlgmr.msra.gmra.mrb[0].mxu0 %vm275_vm0, %v306_v54 }
 0x1b8   : > { %v718_v0 = vpop.f32.mrb[0].mxu1 }
 0x1b9   : > { %v720_v22 = vpop.f32.mrb[1].mxu1 }
 0x1c0   : > { %v1214_v10 = vpop.f32.mrb[0].mxu0 }
 0x1c1   : > { %v1385_v27 = vadd.f32 %v1214_v10, %v718_v0  ;;  %v1216_v23 = vpop.f32.mrb[1].mxu0 }
 0x1c2   : > { %v1386_v24 = vadd.f32 %v1216_v23, %v720_v22 }
 0x1c3   : > { %1221 = vst [vmem:[%s228_s8] sm:$0xff] %v1385_v27 }
 0x1c4   : > { %1222 = vst [vmem:[%s228_s8 + $0x8] sm:$0xff] %v1386_v24 }
 0x1c5   : > { %1481 = shalt.err (!%p1478_p5)
}
 0x1c6   : > { %s1482_s24 = scalar_lea.hbm %s1864_s12, 256  ;;  %s1486_s5 = scalar_lea.hbm %s1915_s4, 512 }
 0x1c7   : > { %p1483_p6 = scmp.ne.s32.totalorder %s1864_s12, %s1482_s24  ;;  %p1487_p10 = scmp.lt.u32.totalorder %s1864_s12, %s1915_s4 }
 0x1c8   : > { %p1488_p11 = scmp.lt.u32.totalorder %s1486_s5, %s1482_s24  ;;  %p1490_p13 = scmp.lt.u32.totalorder %s1482_s24, %s1864_s12 }
 0x1c9   : > { %p1484_p7 = pnand %p1483_p6, %p1623_p4 }
 0x1ca   : > { %p1489_p12 = por %p1488_p11, %p1487_p10 }
 0x1cb   : > { %p1485_p9 = pneg %p1484_p7 }
 0x1cc   : > { %p1491_p0 = por %p1490_p13, %p1489_p12 }
 0x1ce   : > { %p1492_p1 = pnand %p1491_p0, %p1485_p9 }
 0x1d0   : > { %1495 = shalt.err (!%p1492_p1)
}
 0x1d1   : > { %1401 = dma.vmem_to_hbm [thread:$0]  (%p1623_p4), %s1866_s9, 256, %s1864_s12, %s1224_s13  }
 0x1d2 PF: > { %p1407_p2 = scmp.ge.s32.totalorder %s1546_s20, 2  ;;  %s1252_s7 = sand.u32 1, %s1526_s15  }
 0x1d3   : > { %s1253_s8 = scalar_lea.sflag [#allocation3], %s1252_s7 }
 0x1d4   : > { %p1404_p3 = pnand %p1407_p2, %p1630_p8 }
 0x1d6   : > { %1521 = dma.done.wait (!%p1404_p3), %s1253_s8, 256  }
 0x1d7   : > { %1523 = vsyncadd (!%p1404_p3), %s1253_s8, 4294967040  ;;  %s17_s20 = sadd.s32 1, %s1546_s20   ;;  %s1918_s15 = smov %s1530_s16 }
 0x1d8   : > { %p14_p5 = scmp.ge.s32.totalorder %s17_s20, 4   ;;  %s1919_s16 = smov %s1534_s17 }
 0x1d9   : > { %s1920_s17 = smov %s1636_s28  ;;  %s1921_s18 = smov %s1542_s19 }
 0x1da   : > { %s1922_s19 = smov %s1924_s23  ;;  %16 = sbr.rel (!%p14_p5) target bundleno = 4 (0x4), region = 84 }
 0x1e1   :  { %1258 = vsyncpa [#allocation3], 1 }
 0x1e2   :  { %1260 = vsyncpa [#allocation3 + $0x1], 1 }

</bundles_post_ra>
